<compile_context>
chip_gen: v6e
topology: v6e:2x2x1
jax: 0.10.0
libtpu: 0.0.40
codegen_flags: <defaults>
</compile_context>

<pallas_src>
import jax
import jax.numpy as jnp
from jax import lax
from jax.experimental import pallas as pl
from jax.experimental.pallas import tpu as pltpu


def _pca_fwd_kernel(x_ref, comp_ref, bias_ref, o_ref):
    # x tile: (tb, D), components: (NC, D) -- contract over D -> (tb, NC).
    acc = lax.dot_general(
        x_ref[...],
        comp_ref[...],
        dimension_numbers=(((1,), (1,)), ((), ())),
        preferred_element_type=jnp.float32,
    )
    # bias (1, NC) broadcasts over the sublane (tb) axis.
    o_ref[...] = (acc - bias_ref[...]).astype(o_ref.dtype)


def _pick_batch_tile(B, D, NC, itemsize, *, x_tile_target_bytes=4 << 20,
                     vmem_working_set_cap=28 << 20):
    """Batch tile (sublane axis): multiple of 8, VMEM-budgeted, >= 2 grid steps
    for non-trivial batches; a single full-batch block when everything fits."""
    if B <= 0:
        return 1
    # Size from the byte target: the x stream dominates HBM traffic, so make
    # each step's DMA large enough to amortize the ~0.35 us per-step overhead.
    tb = max(8, (x_tile_target_bytes // max(D * itemsize, 1)) // 8 * 8)
    # Keep >= 2 grid steps when the batch is big enough that splitting is
    # worthwhile, so ("parallel",) sharding can feed both v7x TensorCores.
    if B * D * itemsize >= (1 << 20):
        half = (-(-B // 2) + 7) // 8 * 8  # ceil(B/2) rounded up to mult of 8
        tb = min(tb, max(8, half))
    # Feed the VMEM budget back into the tile: double-buffered x + out tiles
    # plus resident components/bias must fit under the cap.
    resident = (NC * D + 2 * NC) * itemsize
    per_row = 2 * (D + NC) * itemsize          # dbl-buffered x row + out row
    tb_vmem = max(8, ((vmem_working_set_cap - resident) // max(per_row, 1)) // 8 * 8)
    tb = min(tb, tb_vmem)
    # A single block covering the whole (small) batch is always legal
    # (block dim == full array dim) and avoids ragged-edge waste.
    if tb >= B:
        return B
    return tb


def pca_forward(x, latent_mean, components, *, compute_dtype=None,
                x_tile_target_bytes=4 << 20):
    """x: (..., D) -> (..., NC) with y = (x - latent_mean) @ components.T."""
    orig_shape = x.shape
    D = orig_shape[-1]
    NC = components.shape[0]
    out_dtype = x.dtype

    x2 = x.reshape(-1, D)
    B = x2.shape[0]
    if B == 0:
        return jnp.zeros((*orig_shape[:-1], NC), dtype=out_dtype)

    if compute_dtype is not None:
        x2 = x2.astype(compute_dtype)
        comp = components.astype(compute_dtype)
    else:
        comp = components

    # Fold the centering into a bias:  (x - m) @ C.T  ==  x @ C.T - (C @ m).
    bias = (components.astype(jnp.float32)
            @ latent_mean.astype(jnp.float32)).reshape(1, NC)

    itemsize = jnp.dtype(x2.dtype).itemsize
    tb = _pick_batch_tile(B, D, NC, itemsize,
                          x_tile_target_bytes=x_tile_target_bytes)
    grid = (pl.cdiv(B, tb),)

    # VMEM limit from the actual working set plus headroom, kept well under
    # v7x's 64 MiB/TC physical VMEM.
    working_set = (2 * tb * D + 2 * tb * NC + NC * D) * itemsize + 2 * NC * 4
    vmem_bytes = int(working_set * 1.25) + (2 << 20)
    vmem_bytes = max(4 << 20, min(vmem_bytes, 40 << 20))

    out = pl.pallas_call(
        _pca_fwd_kernel,
        out_shape=jax.ShapeDtypeStruct((B, NC), out_dtype),
        grid_spec=pltpu.PrefetchScalarGridSpec(
            num_scalar_prefetch=0,
            grid=grid,
            in_specs=[
                pl.BlockSpec((tb, D), lambda i: (i, 0)),   # x tile (streamed)
                pl.BlockSpec((NC, D), lambda i: (0, 0)),   # components (resident)
                pl.BlockSpec((1, NC), lambda i: (0, 0)),   # folded bias (resident)
            ],
            out_specs=pl.BlockSpec((tb, NC), lambda i: (i, 0)),
        ),
        compiler_params=pltpu.CompilerParams(
            dimension_semantics=("parallel",),   # batch tiles across v7x's 2 TCs
            vmem_limit_bytes=vmem_bytes,
        ),
    )(x2, comp, bias)

    return out.reshape(*orig_shape[:-1], NC)


if __name__ == "__main__":
    input_dim = 32
    n_components = 16
    batch = 2
    seq = 8  # extra leading dim to exercise (..., D) semantics

    key = jax.random.PRNGKey(0)
    kx, km, kc = jax.random.split(key, 3)

    # deterministic synthetic "fitted" buffers (module buffer shapes)
    latent_mean = jax.random.normal(km, (input_dim,), dtype=jnp.float32)
    components = jax.random.normal(kc, (n_components, input_dim), dtype=jnp.float32)

    x = jax.random.normal(kx, (batch, seq, input_dim), dtype=jnp.float32)

    y = pca_forward(x, latent_mean, components)
    jax.block_until_ready(y)

    # sanity check against plain-JAX reference of the PyTorch semantics
    y_ref = jnp.matmul(x - latent_mean, components.T)
    assert y.shape == (batch, seq, n_components)
    assert jnp.allclose(y, y_ref, atol=1e-4, rtol=1e-4)

    # TODO(synk): PCA.fit (sklearn decomposition) and invert() are host-side /
    # out of scope for the forward kernel.

    print("KERNEL_OK")
</pallas_src>

<mosaic_0001>
module attributes {stable_mosaic.version = 11 : i64} {
  func.func @_pca_fwd_kernel(%arg0: i32, %arg1: memref<16x32xf32, #tpu.memory_space<vmem>>, %arg2: memref<16x32xf32, #tpu.memory_space<vmem>>, %arg3: memref<1x16xf32, #tpu.memory_space<vmem>>, %arg4: memref<16x16xf32, #tpu.memory_space<vmem>>) attributes {dimension_semantics = [#tpu.dimension_semantics<parallel>], iteration_bounds = array<i64: 1>, scalar_prefetch = 0 : i64, scratch_operands = 0 : i64, tpu.core_type = #tpu.core_type<tc>, window_params = [{transform_indices = @transform_0, window_bounds = array<i64: 16, 32>}, {pipeline_mode = #tpu.pipeline_mode<synchronous>, transform_indices = @transform_1, window_bounds = array<i64: 16, 32>}, {pipeline_mode = #tpu.pipeline_mode<synchronous>, transform_indices = @transform_2, window_bounds = array<i64: 1, 16>}, {transform_indices = @transform_3, window_bounds = array<i64: 16, 16>}]} {
    %c0 = arith.constant 0 : index
    %c0_0 = arith.constant 0 : index
    %0 = vector.load %arg1[%c0, %c0_0] : memref<16x32xf32, #tpu.memory_space<vmem>>, vector<16x32xf32>
    %c0_1 = arith.constant 0 : index
    %c0_2 = arith.constant 0 : index
    %1 = vector.load %arg2[%c0_1, %c0_2] : memref<16x32xf32, #tpu.memory_space<vmem>>, vector<16x32xf32>
    %cst = arith.constant dense<0.000000e+00> : vector<16x16xf32>
    %2 = tpu.matmul %0, %1, %cst {dimension_numbers = #tpu.dot_dimension_numbers<[1], [1], [0], [0], [0, 0, 1, 0], [], []>} : vector<16x32xf32>, vector<16x32xf32>, vector<16x16xf32> -> vector<16x16xf32>
    %c0_3 = arith.constant 0 : index
    %c0_4 = arith.constant 0 : index
    %3 = vector.load %arg3[%c0_3, %c0_4] : memref<1x16xf32, #tpu.memory_space<vmem>>, vector<1x16xf32>
    %4 = vector.broadcast %3 : vector<1x16xf32> to vector<16x16xf32>
    %5 = arith.subf %2, %4 : vector<16x16xf32>
    %c0_5 = arith.constant 0 : index
    %c0_6 = arith.constant 0 : index
    %6 = vector.load %arg4[%c0_5, %c0_6] : memref<16x16xf32, #tpu.memory_space<vmem>>, vector<16x16xf32>
    tpu.vector_store %arg4[%c0_5, %c0_6], %5 {strides = array<i32>} : memref<16x16xf32, #tpu.memory_space<vmem>>, vector<16x16xf32>,
    return
  }
  func.func @transform_0(%arg0: i32) -> (i32, i32) {
    %c0_i32 = arith.constant 0 : i32
    %c0_i32_0 = arith.constant 0 : i32
    return %arg0, %c0_i32 : i32, i32
  }
  func.func @transform_1(%arg0: i32) -> (i32, i32) {
    %c0_i32 = arith.constant 0 : i32
    %c0_i32_0 = arith.constant 0 : i32
    %c0_i32_1 = arith.constant 0 : i32
    return %c0_i32, %c0_i32_0 : i32, i32
  }
  func.func @transform_2(%arg0: i32) -> (i32, i32) {
    %c0_i32 = arith.constant 0 : i32
    %c0_i32_0 = arith.constant 0 : i32
    %c0_i32_1 = arith.constant 0 : i32
    return %c0_i32, %c0_i32_0 : i32, i32
  }
  func.func @transform_3(%arg0: i32) -> (i32, i32) {
    %c0_i32 = arith.constant 0 : i32
    %c0_i32_0 = arith.constant 0 : i32
    return %arg0, %c0_i32 : i32, i32
  }
}

</mosaic_0001>

<bundles_post_ra>
// kernel: tpu_custom_call.1
= control target key start
LH: loop header
LB: loop body
LE: loop exit
PB: predicated region body
PF: predicated region fallthrough
CT: control target
= control target key end

     0   :  { %8 = vsyncpa [#allocation3], 0  ;;  %s298_s0 = inlined_call_operand.hbm [shape: f32[16,32], index: 0, kind: input, shape index: {}]   ;;  %s299_s1 = inlined_call_operand.hbm [shape: f32[16,32], index: 1, kind: input, shape index: {}]   ;;  %s300_s2 = inlined_call_operand.vmem [shape: f32[1,16], index: 2, kind: input, shape index: {}]   ;;  %s301_s3 = inlined_call_operand.hbm [shape: f32[16,16], index: 3, kind: output, shape index: {}]  }
   0x1   :  { %9 = vsyncpa [#allocation6], 0 }
   0x2   :  { %10 = vsyncpa [#allocation4], 0  ;;  %s252_s12 = smov [#allocation2]  }
   0x3   :  { %s16_s13 = sshll.u32 %s252_s12, 4  ;;  %s17_s13 = int_to_ptr.vmem [resolvable:$true] %s16_s13 }
   0x4   :  { %s194_s14 = scalar_lea.vmem %s17_s13, 256  ;;  %p199_p1 = scmp.lt.s32.totalorder %s17_s13, %s17_s13 }
   0x5   :  { %p195_p0 = scmp.ne.s32.totalorder %s17_s13, %s194_s14  ;;  %p200_p2 = scmp.lt.s32.totalorder %s194_s14, %s194_s14 }
   0x7   :  { %p201_p3 = por %p200_p2, %p199_p1 }
   0x9   :  { %p202_p4 = pnand %p201_p3, %p195_p0 }
   0xb   :  { %205 = shalt.err (!%p202_p4)
}
   0xc   :  { %s253_s15 = smov 128   ;;  %s254_s16 = smov 8  }
   0xd   :  { %22 = dma.hbm_to_vmem [thread:$0]  %s298_s0, 256, %s17_s13, [#allocation3], %s253_s15, %s253_s15, %s254_s16  }
   0xe   :  { %s255_s19 = smov [#allocation5]  }
   0xf   :  { %s28_s20 = sshll.u32 %s255_s19, 4  ;;  %s29_s20 = int_to_ptr.vmem [resolvable:$true] %s28_s20 }
  0x10   :  { %s214_s21 = scalar_lea.vmem %s29_s20, 256  ;;  %p219_p6 = scmp.lt.s32.totalorder %s29_s20, %s29_s20 }
  0x11   :  { %p215_p5 = scmp.ne.s32.totalorder %s29_s20, %s214_s21  ;;  %p220_p7 = scmp.lt.s32.totalorder %s214_s21, %s214_s21 }
  0x13   :  { %p221_p8 = por %p220_p7, %p219_p6 }
  0x15   :  { %p222_p9 = pnand %p221_p8, %p215_p5 }
  0x17   :  { %225 = shalt.err (!%p222_p9)
}
  0x18   :  { %34 = dma.hbm_to_vmem [thread:$0]  %s299_s1, 256, %s29_s20, [#allocation6], %s253_s15, %s253_s15, %s254_s16  }
  0x19   :  { %246 = dma.done.wait [#allocation3], 256  }
  0x1a   :  { %247 = vsyncadd [#allocation3], 4294967040 }
  0x1b   :  { %248 = dma.done.wait [#allocation6], 256  }
  0x1c   :  { %249 = vsyncadd [#allocation6], 4294967040  ;;  %vm47_vm0 = vcmask 261120   ;;  %v46_v0 = vld [vmem:[#allocation5 + $0x8] sm:$0xff]  ;;  %v45_v1 = vld [vmem:[#allocation5] sm:$0xff]  ;;  %vm144_vm1 = vcmask 130048  }
  0x1d   :  { %v43_v2 = vld [vmem:[#allocation2] sm:$0xff]  ;;  %174 = vmatprep.subr.msk.mxu0 %vm47_vm0, %v46_v0  ;;  %v44_v3 = vld [vmem:[#allocation2 + $0x8] sm:$0xff]  ;;  %s256_s1 = smov [#allocation7]  }
  0x1e   :  { %178 = vmatprep.mubr.msk.f32.mxu0 %vm47_vm0, %v43_v2  ;;  %175 = vmatpush3.xpose.msk.msra.mxu0 %vm47_vm0, %v46_v0  ;;  %v169_v4 = vld [vmem:[%s300_s2] ss:$0 sm:$0xff]  ;;  %s152_s25 = sshll.u32 %s256_s1, 4  ;;  %s153_s25 = int_to_ptr.vmem [resolvable:$true] %s152_s25 }
  0x1f   :  { %176 = vmatprep.subr.msk.mxu0 %vm47_vm0, %v45_v1  ;;  %s226_s26 = scalar_lea.vmem %s153_s25, 256  ;;  %p231_p11 = scmp.lt.s32.totalorder %s153_s25, %s153_s25 }
  0x20   :  { %p227_p10 = scmp.ne.s32.totalorder %s153_s25, %s226_s26  ;;  %p232_p12 = scmp.lt.s32.totalorder %s226_s26, %s226_s26 }
  0x22   :  { %177 = vmatpush3.xpose.msk.msra.mxu0 %vm47_vm0, %v45_v1  ;;  %p233_p13 = por %p232_p12, %p231_p11 }
  0x24   :  { %p234_p0 = pnand %p233_p13, %p227_p10 }
  0x25   :  { %179 = vmatmul.mubr.msk.f32.vlgmr.msra.gmra.mxu0 %vm47_vm0, %v44_v3 }
  0xe5   :  { %v180_v5 = vpop.f32.mrf.mxu0 }
  0xe6   :  { %v143_v6 = vsub.f32 %v180_v5, %v169_v4 }
  0xe7   :  { %v126_v7 = vpop.f32.mrf.mxu0 }
  0xe8   :  { %v142_v8 = vsub.f32 %v126_v7, %v169_v4  ;;  %146 = vst.msk [vmem:[#allocation7 + $0x8] sm:$0xff] %vm144_vm1, %v143_v6 }
  0xea   :  { %145 = vst.msk [vmem:[#allocation7] sm:$0xff] %vm144_vm1, %v142_v8 }
  0xeb   :  { %237 = shalt.err (!%p234_p0)
}
  0xec   :  { %158 = dma.vmem_to_hbm [thread:$0]  %s153_s25, 256, %s301_s3, [#allocation4], %s253_s15, %s253_s15, %s254_s16  }
  0xed   :  { %250 = dma.done.wait [#allocation4], 256  }
  0xee   :  { %251 = vsyncadd [#allocation4], 4294967040 }
  0xef   :  { %162 = vsyncpa [#allocation3], 1 }
  0xf0   :  { %163 = vsyncpa [#allocation6], 1 }
  0xf1   :  { %164 = vsyncpa [#allocation4], 1 }

</bundles_post_ra>
